<compile_context>
chip_gen: v7x
topology: tpu7x:2x2x1
jax: 0.10.0
libtpu: 0.0.40
codegen_flags: <defaults>
</compile_context>

<pallas_src>
import jax
import jax.numpy as jnp
from jax import lax
from jax.experimental import pallas as pl
from jax.experimental.pallas import tpu as pltpu

_LANE = 128


def _round_up(x, m):
    return (x + m - 1) // m * m


def _tpu_limits():
    """(vmem_capacity_bytes, tensorcore_count) with conservative fallbacks."""
    vmem_cap = 64 << 20       # v7x per-TC capacity: safe floor for all gens
    cores = 1
    get_info = getattr(pltpu, "get_tpu_info", None)
    if get_info is not None:
        try:
            info = get_info()
            cap = int(getattr(info, "vmem_capacity_bytes", 0) or 0)
            if cap > 0:
                vmem_cap = cap
            for name in ("num_cores", "num_tensorcores", "num_tensor_cores",
                         "tensorcore_count", "core_count"):
                v = getattr(info, name, None)
                if v is not None:
                    v = int(v)
                    if v > 0:
                        cores = v
                        break
        except Exception:
            pass
    return vmem_cap, cores


def _clamp_vmem_limit(vmem_cap, need_bytes):
    """Never request the full physical VMEM (leave compiler scratch headroom)."""
    return int(min(max(need_bytes, 32 << 20), (vmem_cap * 7) // 8))


def _pick_batch_tile(B, per_elem_bytes, budget_bytes, cores, max_bt=8):
    """Largest divisor of B (capped) whose packed f32 feature block fits the
    per-step budget.  Keep >=2 grid steps only on multi-TensorCore parts so
    the 'parallel' batch axis can be sharded; on single-core chips take the
    biggest block (fewer, larger DMAs -> closer to HBM roofline)."""
    best = 1
    for bt in range(1, min(B, max_bt) + 1):
        if B % bt:
            continue
        if bt * per_elem_bytes > budget_bytes:
            continue
        if cores >= 2 and B >= 2 and (B // bt) < 2:
            continue
        best = bt
    return best


# ----------------------------------------------------------------------------
# Single-block path: one grid step holds bt full (C, HW) feature blocks.
# ----------------------------------------------------------------------------
def _make_single_block_kernel(bt, hw_valid, hw_pad):
    need_mask = hw_pad != hw_valid

    def kernel(x_ref, e_ref, wc_ref, bc_ref, out_ref):
        # x_ref:  (bt, C, HWp)   e_ref: (bt, 1, C)
        # wc_ref: (C, C) PyTorch (out,in) layout   bc_ref: (C, 1)
        wc = wc_ref[...]
        bc = bc_ref[...]
        if need_mask:
            lane = lax.broadcasted_iota(jnp.int32, (1, hw_pad), 1)

        def body(bi, carry):
            x = x_ref[bi]                                           # (C, HWp)
            # 1x1 conv == per-pixel linear; channels on sublanes, HW on lanes.
            fproj = jnp.dot(wc, x, preferred_element_type=jnp.float32) + bc
            # Attention scores: (1,C) @ (C,HW) -> lane-dense (1,HW).
            scores = jnp.dot(e_ref[bi], fproj,
                             preferred_element_type=jnp.float32)    # (1, HWp)
            if need_mask:
                scores = jnp.where(lane < hw_valid, scores, -jnp.inf)
            m = jnp.max(scores, axis=-1, keepdims=True)
            p = jnp.exp(scores - m)
            s = jnp.sum(p, axis=-1, keepdims=True)
            sftm = p * pl.reciprocal(s, approx=True)                # s >= 1
            # One full contiguous (C, HWp) store per batch element.
            out_ref[bi] = (fproj * sftm).astype(out_ref.dtype)
            return carry

        if bt == 1:
            body(0, None)
        else:
            lax.fori_loop(0, bt, body, None, unroll=True)

    return kernel


def _run_single_block(x, e, wc, bc, HW, hw_pad, out_dtype,
                      block_budget_bytes, vmem_cap, cores):
    B, C, _ = x.shape
    in_bytes = jnp.dtype(x.dtype).itemsize
    out_bytes = jnp.dtype(out_dtype).itemsize
    xp = x if hw_pad == HW else jnp.pad(x, ((0, 0), (0, 0), (0, hw_pad - HW)))

    bt = _pick_batch_tile(B, C * hw_pad * 4, block_budget_bytes, cores)
    grid = (B // bt,)

    need = (2 * bt * C * hw_pad * in_bytes        # double-buffered input
            + 2 * bt * C * hw_pad * out_bytes     # double-buffered output
            + C * hw_pad * 4                      # f32 fproj intermediate
            + (C * C + C + bt * C) * 4            # weights / e
            + (4 << 20))                          # headroom
    vmem_limit = _clamp_vmem_limit(vmem_cap, need)

    out = pl.pallas_call(
        _make_single_block_kernel(bt, HW, hw_pad),
        out_shape=jax.ShapeDtypeStruct((B, C, hw_pad), out_dtype),
        grid_spec=pltpu.PrefetchScalarGridSpec(
            num_scalar_prefetch=0,
            grid=grid,
            in_specs=[
                pl.BlockSpec((bt, C, hw_pad), lambda b: (b, 0, 0)),  # features
                pl.BlockSpec((bt, 1, C), lambda b: (b, 0, 0)),       # e
                pl.BlockSpec((C, C), lambda b: (0, 0)),              # conv W
                pl.BlockSpec((C, 1), lambda b: (0, 0)),              # conv b
            ],
            out_specs=pl.BlockSpec((bt, C, hw_pad), lambda b: (b, 0, 0)),
        ),
        compiler_params=pltpu.CompilerParams(
            dimension_semantics=("parallel",),
            vmem_limit_bytes=vmem_limit,
        ),
    )(xp, e, wc, bc)

    if hw_pad != HW:
        out = out[:, :, :HW]
    return out


# ----------------------------------------------------------------------------
# HW-tiled two-pass path (large C*HW, or B==1 on multi-core parts).
# scores = e @ (wc@x + bc); the e.bc term is uniform over positions and
# softmax is shift-invariant, so we fold ew = e @ wc in the wrapper and drop
# the constant entirely.
# ----------------------------------------------------------------------------
def _make_stats_kernel(hw_valid, hw_t, need_mask):
    def kernel(x_ref, ew_ref, m_ref, l_ref):
        h = pl.program_id(1)

        @pl.when(h == 0)
        def _():
            m_ref[...] = jnp.full(m_ref.shape, -jnp.inf, jnp.float32)
            l_ref[...] = jnp.zeros(l_ref.shape, jnp.float32)

        scores = jnp.dot(ew_ref[...], x_ref[...],
                         preferred_element_type=jnp.float32)        # (1, hw_t)
        if need_mask:
            lane = lax.broadcasted_iota(jnp.int32, (1, hw_t), 1) + h * hw_t
            scores = jnp.where(lane < hw_valid, scores, -jnp.inf)
        m_prev = m_ref[...]
        m_new = jnp.maximum(m_prev, jnp.max(scores, axis=-1, keepdims=True))
        l_ref[...] = (l_ref[...] * jnp.exp(m_prev - m_new)
                      + jnp.sum(jnp.exp(scores - m_new), axis=-1, keepdims=True))
        m_ref[...] = m_new
    return kernel


def _make_apply_kernel(hw_valid, hw_t, need_mask):
    def kernel(x_ref, ew_ref, wc_ref, bc_ref, m_ref, invl_ref, out_ref):
        x = x_ref[...]                                               # (C, hw_t)
        fproj = jnp.dot(wc_ref[...], x,
                        preferred_element_type=jnp.float32) + bc_ref[...]
        scores = jnp.dot(ew_ref[...], x, preferred_element_type=jnp.float32)
        if need_mask:
            h = pl.program_id(1)
            lane = lax.broadcasted_iota(jnp.int32, (1, hw_t), 1) + h * hw_t
            scores = jnp.where(lane < hw_valid, scores, -jnp.inf)
        sftm = jnp.exp(scores - m_ref[...]) * invl_ref[...]          # (1, hw_t)
        out_ref[...] = (fproj * sftm).astype(out_ref.dtype)
    return kernel


def _run_tiled(x, e, wc, bc, HW, out_dtype, block_budget_bytes, vmem_cap):
    B, C, _ = x.shape
    in_bytes = jnp.dtype(x.dtype).itemsize
    out_bytes = jnp.dtype(out_dtype).itemsize

    hw_cap = max(_LANE, (block_budget_bytes // (C * 4)) // _LANE * _LANE)
    hw_pad128 = _round_up(HW, _LANE)
    hw_t = min(hw_cap, hw_pad128)
    if hw_t >= hw_pad128 and hw_pad128 >= 2 * _LANE:
        # make sure there are >=2 spatial tiles so both TCs get work on pass 2
        hw_t = max(_LANE, (hw_pad128 // 2) // _LANE * _LANE)
    hw_pad = _round_up(HW, hw_t)
    n_hw = hw_pad // hw_t
    need_mask = hw_pad != HW

    xp = x if hw_pad == HW else jnp.pad(x, ((0, 0), (0, 0), (0, hw_pad - HW)))
    ew = jnp.einsum("bko,oi->bki", e, wc).astype(jnp.float32)        # (B,1,C)

    # Pass 1: online max / sum(exp) over spatial tiles.
    need1 = 2 * (C * hw_t * in_bytes + C * 4) + (4 << 20)
    m, l = pl.pallas_call(
        _make_stats_kernel(HW, hw_t, need_mask),
        out_shape=(jax.ShapeDtypeStruct((B, 1, 1), jnp.float32),
                   jax.ShapeDtypeStruct((B, 1, 1), jnp.float32)),
        grid_spec=pltpu.PrefetchScalarGridSpec(
            num_scalar_prefetch=0,
            grid=(B, n_hw),
            in_specs=[
                pl.BlockSpec((pl.Squeezed(), C, hw_t), lambda b, h: (b, 0, h)),
                pl.BlockSpec((pl.Squeezed(), 1, C), lambda b, h: (b, 0, 0)),
            ],
            out_specs=[
                pl.BlockSpec((pl.Squeezed(), 1, 1), lambda b, h: (b, 0, 0)),
                pl.BlockSpec((pl.Squeezed(), 1, 1), lambda b, h: (b, 0, 0)),
            ],
        ),
        compiler_params=pltpu.CompilerParams(
            dimension_semantics=("parallel", "arbitrary"),
            vmem_limit_bytes=_clamp_vmem_limit(vmem_cap, need1),
        ),
    )(xp, ew)

    inv_l = (1.0 / l).astype(jnp.float32)

    # Pass 2: recompute conv + scores per tile and scale; fully parallel.
    need2 = (2 * C * hw_t * in_bytes + 2 * C * hw_t * out_bytes
             + C * hw_t * 4 + C * C * 4 + (4 << 20))
    out = pl.pallas_call(
        _make_apply_kernel(HW, hw_t, need_mask),
        out_shape=jax.ShapeDtypeStruct((B, C, hw_pad), out_dtype),
        grid_spec=pltpu.PrefetchScalarGridSpec(
            num_scalar_prefetch=0,
            grid=(B, n_hw),
            in_specs=[
                pl.BlockSpec((pl.Squeezed(), C, hw_t), lambda b, h: (b, 0, h)),
                pl.BlockSpec((pl.Squeezed(), 1, C), lambda b, h: (b, 0, 0)),
                pl.BlockSpec((C, C), lambda b, h: (0, 0)),
                pl.BlockSpec((C, 1), lambda b, h: (0, 0)),
                pl.BlockSpec((pl.Squeezed(), 1, 1), lambda b, h: (b, 0, 0)),
                pl.BlockSpec((pl.Squeezed(), 1, 1), lambda b, h: (b, 0, 0)),
            ],
            out_specs=pl.BlockSpec((pl.Squeezed(), C, hw_t),
                                   lambda b, h: (b, 0, h)),
        ),
        compiler_params=pltpu.CompilerParams(
            dimension_semantics=("parallel", "parallel"),
            vmem_limit_bytes=_clamp_vmem_limit(vmem_cap, need2),
        ),
    )(xp, ew, wc, bc, m, inv_l)

    if hw_pad != HW:
        out = out[:, :, :HW]
    return out


# ----------------------------------------------------------------------------
# Public wrapper
# ----------------------------------------------------------------------------
def channel_projection_combiner(features_nchw, command_embedding, params, *,
                                out_dtype=jnp.float32,
                                block_budget_bytes=None,
                                force_tiled=False):
    """features_nchw: (B, C, H, W); command_embedding: (B, D)."""
    B, C, H, W = features_nchw.shape
    HW = H * W

    x = features_nchw.reshape(B, C, HW)                  # free view

    # Command MLP hoisted out of the kernel (M=1 matmuls waste the MXU).
    h = jnp.maximum(command_embedding @ params["w1"] + params["b1"], 0.0)
    e = (h @ params["w2"] + params["b2"]).reshape(B, 1, C).astype(jnp.float32)

    wc = params["wc"].astype(jnp.float32)                # (out_c, in_c)
    bc = params["bc"].reshape(C, 1).astype(jnp.float32)

    vmem_cap, cores = _tpu_limits()
    if block_budget_bytes is None:
        # 4x block (double-buffered in+out) stays under ~VMEM/2.
        block_budget_bytes = vmem_cap // 8

    hw_pad128 = _round_up(HW, _LANE)
    per_elem_bytes = C * hw_pad128 * 4
    use_tiled = (force_tiled
                 or per_elem_bytes > block_budget_bytes
                 or (cores >= 2 and B == 1 and per_elem_bytes > (4 << 20)))

    if use_tiled:
        out = _run_tiled(x, e, wc, bc, HW, out_dtype,
                         block_budget_bytes, vmem_cap)
    else:
        out = _run_single_block(x, e, wc, bc, HW, hw_pad128, out_dtype,
                                block_budget_bytes, vmem_cap, cores)
    return out.reshape(B, C, H, W)


def _reference(features_nchw, command_embedding, params):
    """Plain-JAX reference reproducing the PyTorch forward."""
    B, C, H, W = features_nchw.shape
    f = jnp.einsum("oi,bihw->bohw", params["wc"], features_nchw) \
        + params["bc"].reshape(1, C, 1, 1)
    h = jnp.maximum(command_embedding @ params["w1"] + params["b1"], 0.0)
    e = h @ params["w2"] + params["b2"]                     # (B, C)
    scores = jnp.einsum("bc,bcp->bp", e, f.reshape(B, C, H * W))
    sftm = jax.nn.softmax(scores, axis=-1).reshape(B, 1, H, W)
    return sftm * f


if __name__ == "__main__":
    # Shapes consistent with the module (command_dim / channels scaled down;
    # MLP hidden kept at 512 as in the module definition).
    B, C, H, W = 2, 16, 16, 16
    D = 32
    HID = 512

    key = jax.random.PRNGKey(0)
    ks = jax.random.split(key, 8)
    params = {
        "wc": 0.05 * jax.random.normal(ks[0], (C, C), jnp.float32),   # conv W (out,in)
        "bc": 0.05 * jax.random.normal(ks[1], (1, C), jnp.float32),   # conv bias
        "w1": 0.05 * jax.random.normal(ks[2], (D, HID), jnp.float32), # Linear1 W^T
        "b1": 0.05 * jax.random.normal(ks[3], (1, HID), jnp.float32),
        "w2": 0.05 * jax.random.normal(ks[4], (HID, C), jnp.float32), # Linear2 W^T
        "b2": 0.05 * jax.random.normal(ks[5], (1, C), jnp.float32),
    }
    features = jax.random.normal(ks[6], (B, C, H, W), jnp.float32)
    command = jax.random.normal(ks[7], (B, D), jnp.float32)
    ref = _reference(features, command, params)

    # 1) default path (single-block, HW already a multiple of 128)
    out = jax.block_until_ready(
        channel_projection_combiner(features, command, params))
    assert out.shape == (B, C, H, W)
    assert jnp.allclose(out, ref, atol=3e-5, rtol=3e-3), "single-block mismatch"

    # 2) HW-tiled two-pass softmax path (v7x / large C*HW fallback), forced
    out_t = jax.block_until_ready(
        channel_projection_combiner(features, command, params, force_tiled=True))
    assert jnp.allclose(out_t, ref, atol=3e-5, rtol=3e-3), "tiled mismatch"

    # 3) non-multiple-of-128 spatial size -> lane padding + -inf score masking
    B2, C2, H2, W2 = 3, 8, 12, 12
    f2 = jax.random.normal(ks[6], (B2, C2, H2, W2), jnp.float32)
    cmd2 = jax.random.normal(ks[7], (B2, D), jnp.float32)
    p2 = dict(params)
    p2["wc"] = 0.05 * jax.random.normal(ks[0], (C2, C2), jnp.float32)
    p2["bc"] = 0.05 * jax.random.normal(ks[1], (1, C2), jnp.float32)
    p2["w2"] = 0.05 * jax.random.normal(ks[4], (HID, C2), jnp.float32)
    p2["b2"] = 0.05 * jax.random.normal(ks[5], (1, C2), jnp.float32)
    ref2 = _reference(f2, cmd2, p2)
    out2 = jax.block_until_ready(channel_projection_combiner(f2, cmd2, p2))
    assert jnp.allclose(out2, ref2, atol=3e-5, rtol=3e-3), "masked single mismatch"
    out2t = jax.block_until_ready(
        channel_projection_combiner(f2, cmd2, p2, force_tiled=True))
    assert jnp.allclose(out2t, ref2, atol=3e-5, rtol=3e-3), "masked tiled mismatch"

    # 4) optional bf16 output (HBM-bound op: halves write bytes)
    out_bf = jax.block_until_ready(
        channel_projection_combiner(features, command, params,
                                    out_dtype=jnp.bfloat16))
    assert out_bf.dtype == jnp.bfloat16
    assert jnp.allclose(out_bf.astype(jnp.float32), ref,
                        atol=1e-4, rtol=2e-2), "bf16 output mismatch"

    print("KERNEL_OK")
</pallas_src>

<mosaic_0001>
module attributes {stable_mosaic.version = 11 : i64} {
  func.func @kernel(%arg0: i32, %arg1: memref<2x16x256xf32, #tpu.memory_space<vmem>>, %arg2: memref<2x1x16xf32, #tpu.memory_space<vmem>>, %arg3: memref<16x16xf32, #tpu.memory_space<vmem>>, %arg4: memref<16x1xf32, #tpu.memory_space<vmem>>, %arg5: memref<2x16x256xf32, #tpu.memory_space<vmem>>) attributes {dimension_semantics = [#tpu.dimension_semantics<parallel>], iteration_bounds = array<i64: 1>, scalar_prefetch = 0 : i64, scratch_operands = 0 : i64, tpu.core_type = #tpu.core_type<tc>, window_params = [{transform_indices = @transform_0, window_bounds = array<i64: 2, 16, 256>}, {transform_indices = @transform_1, window_bounds = array<i64: 2, 1, 16>}, {pipeline_mode = #tpu.pipeline_mode<synchronous>, transform_indices = @transform_2, window_bounds = array<i64: 16, 16>}, {pipeline_mode = #tpu.pipeline_mode<synchronous>, transform_indices = @transform_3, window_bounds = array<i64: 16, 1>}, {transform_indices = @transform_4, window_bounds = array<i64: 2, 16, 256>}]} {
    %c0 = arith.constant 0 : index
    %c0_0 = arith.constant 0 : index
    %0 = vector.load %arg3[%c0, %c0_0] : memref<16x16xf32, #tpu.memory_space<vmem>>, vector<16x16xf32>
    %c0_1 = arith.constant 0 : index
    %c0_2 = arith.constant 0 : index
    %1 = vector.load %arg4[%c0_1, %c0_2] : memref<16x1xf32, #tpu.memory_space<vmem>>, vector<16x1xf32>
    %c0_i32 = arith.constant 0 : i32
    %2 = arith.index_cast %c0_i32 : i32 to index
    %c0_3 = arith.constant 0 : index
    %c0_4 = arith.constant 0 : index
    %3 = vector.load %arg1[%2, %c0_3, %c0_4] : memref<2x16x256xf32, #tpu.memory_space<vmem>>, vector<1x16x256xf32>
    %4 = vector.shape_cast %3 : vector<1x16x256xf32> to vector<16x256xf32>
    %cst = arith.constant dense<0.000000e+00> : vector<16x256xf32>
    %5 = tpu.matmul %0, %4, %cst {dimension_numbers = #tpu.dot_dimension_numbers<[1], [0], [0], [1], [0, 0, 1, 1], [], []>} : vector<16x16xf32>, vector<16x256xf32>, vector<16x256xf32> -> vector<16x256xf32>
    %6 = vector.broadcast %1 : vector<16x1xf32> to vector<16x256xf32>
    %7 = arith.addf %5, %6 : vector<16x256xf32>
    %8 = arith.index_cast %c0_i32 : i32 to index
    %c0_5 = arith.constant 0 : index
    %c0_6 = arith.constant 0 : index
    %9 = vector.load %arg2[%8, %c0_5, %c0_6] : memref<2x1x16xf32, #tpu.memory_space<vmem>>, vector<1x1x16xf32>
    %10 = vector.shape_cast %9 : vector<1x1x16xf32> to vector<1x16xf32>
    %cst_7 = arith.constant dense<0.000000e+00> : vector<1x256xf32>
    %11 = tpu.matmul %10, %7, %cst_7 {dimension_numbers = #tpu.dot_dimension_numbers<[1], [0], [0], [1], [0, 0, 1, 1], [], []>} : vector<1x16xf32>, vector<16x256xf32>, vector<1x256xf32> -> vector<1x256xf32>
    %cst_8 = arith.constant dense<0xFF800000> : vector<1xf32>
    %12 = vector.multi_reduction <maximumf>, %11, %cst_8 [1] : vector<1x256xf32> to vector<1xf32>
    %13 = vector.shape_cast %12 : vector<1xf32> to vector<1x1xf32>
    %14 = vector.broadcast %13 : vector<1x1xf32> to vector<1x256xf32>
    %15 = arith.subf %11, %14 : vector<1x256xf32>
    %16 = math.exp %15 : vector<1x256xf32>
    %cst_9 = arith.constant dense<0.000000e+00> : vector<1xf32>
    %17 = vector.multi_reduction <add>, %16, %cst_9 [1] : vector<1x256xf32> to vector<1xf32>
    %18 = vector.shape_cast %17 : vector<1xf32> to vector<1x1xf32>
    %19 = tpu.reciprocal %18 {approx = true} : vector<1x1xf32> -> vector<1x1xf32>
    %20 = vector.broadcast %19 : vector<1x1xf32> to vector<1x256xf32>
    %21 = arith.mulf %16, %20 : vector<1x256xf32>
    %22 = vector.broadcast %21 : vector<1x256xf32> to vector<16x256xf32>
    %23 = arith.mulf %7, %22 : vector<16x256xf32>
    %24 = arith.index_cast %c0_i32 : i32 to index
    %c0_10 = arith.constant 0 : index
    %c0_11 = arith.constant 0 : index
    %25 = vector.load %arg5[%24, %c0_10, %c0_11] : memref<2x16x256xf32, #tpu.memory_space<vmem>>, vector<1x16x256xf32>
    %26 = vector.shape_cast %25 : vector<1x16x256xf32> to vector<16x256xf32>
    %27 = vector.shape_cast %23 : vector<16x256xf32> to vector<1x16x256xf32>
    tpu.vector_store %arg5[%24, %c0_10, %c0_11], %27 {strides = array<i32>} : memref<2x16x256xf32, #tpu.memory_space<vmem>>, vector<1x16x256xf32>,
    %c1_i32 = arith.constant 1 : i32
    %28 = arith.index_cast %c1_i32 : i32 to index
    %c0_12 = arith.constant 0 : index
    %c0_13 = arith.constant 0 : index
    %29 = vector.load %arg1[%28, %c0_12, %c0_13] : memref<2x16x256xf32, #tpu.memory_space<vmem>>, vector<1x16x256xf32>
    %30 = vector.shape_cast %29 : vector<1x16x256xf32> to vector<16x256xf32>
    %cst_14 = arith.constant dense<0.000000e+00> : vector<16x256xf32>
    %31 = tpu.matmul %0, %30, %cst_14 {dimension_numbers = #tpu.dot_dimension_numbers<[1], [0], [0], [1], [0, 0, 1, 1], [], []>} : vector<16x16xf32>, vector<16x256xf32>, vector<16x256xf32> -> vector<16x256xf32>
    %32 = vector.broadcast %1 : vector<16x1xf32> to vector<16x256xf32>
    %33 = arith.addf %31, %32 : vector<16x256xf32>
    %34 = arith.index_cast %c1_i32 : i32 to index
    %c0_15 = arith.constant 0 : index
    %c0_16 = arith.constant 0 : index
    %35 = vector.load %arg2[%34, %c0_15, %c0_16] : memref<2x1x16xf32, #tpu.memory_space<vmem>>, vector<1x1x16xf32>
    %36 = vector.shape_cast %35 : vector<1x1x16xf32> to vector<1x16xf32>
    %cst_17 = arith.constant dense<0.000000e+00> : vector<1x256xf32>
    %37 = tpu.matmul %36, %33, %cst_17 {dimension_numbers = #tpu.dot_dimension_numbers<[1], [0], [0], [1], [0, 0, 1, 1], [], []>} : vector<1x16xf32>, vector<16x256xf32>, vector<1x256xf32> -> vector<1x256xf32>
    %cst_18 = arith.constant dense<0xFF800000> : vector<1xf32>
    %38 = vector.multi_reduction <maximumf>, %37, %cst_18 [1] : vector<1x256xf32> to vector<1xf32>
    %39 = vector.shape_cast %38 : vector<1xf32> to vector<1x1xf32>
    %40 = vector.broadcast %39 : vector<1x1xf32> to vector<1x256xf32>
    %41 = arith.subf %37, %40 : vector<1x256xf32>
    %42 = math.exp %41 : vector<1x256xf32>
    %cst_19 = arith.constant dense<0.000000e+00> : vector<1xf32>
    %43 = vector.multi_reduction <add>, %42, %cst_19 [1] : vector<1x256xf32> to vector<1xf32>
    %44 = vector.shape_cast %43 : vector<1xf32> to vector<1x1xf32>
    %45 = tpu.reciprocal %44 {approx = true} : vector<1x1xf32> -> vector<1x1xf32>
    %46 = vector.broadcast %45 : vector<1x1xf32> to vector<1x256xf32>
    %47 = arith.mulf %42, %46 : vector<1x256xf32>
    %48 = vector.broadcast %47 : vector<1x256xf32> to vector<16x256xf32>
    %49 = arith.mulf %33, %48 : vector<16x256xf32>
    %50 = arith.index_cast %c1_i32 : i32 to index
    %c0_20 = arith.constant 0 : index
    %c0_21 = arith.constant 0 : index
    %51 = vector.load %arg5[%50, %c0_20, %c0_21] : memref<2x16x256xf32, #tpu.memory_space<vmem>>, vector<1x16x256xf32>
    %52 = vector.shape_cast %51 : vector<1x16x256xf32> to vector<16x256xf32>
    %53 = vector.shape_cast %49 : vector<16x256xf32> to vector<1x16x256xf32>
    tpu.vector_store %arg5[%50, %c0_20, %c0_21], %53 {strides = array<i32>} : memref<2x16x256xf32, #tpu.memory_space<vmem>>, vector<1x16x256xf32>,
    %c2_i32 = arith.constant 2 : i32
    return
  }
  func.func @transform_0(%arg0: i32) -> (i32, i32, i32) {
    %c0_i32 = arith.constant 0 : i32
    %c0_i32_0 = arith.constant 0 : i32
    %c0_i32_1 = arith.constant 0 : i32
    return %arg0, %c0_i32, %c0_i32_0 : i32, i32, i32
  }
  func.func @transform_1(%arg0: i32) -> (i32, i32, i32) {
    %c0_i32 = arith.constant 0 : i32
    %c0_i32_0 = arith.constant 0 : i32
    %c0_i32_1 = arith.constant 0 : i32
    return %arg0, %c0_i32, %c0_i32_0 : i32, i32, i32
  }
  func.func @transform_2(%arg0: i32) -> (i32, i32) {
    %c0_i32 = arith.constant 0 : i32
    %c0_i32_0 = arith.constant 0 : i32
    %c0_i32_1 = arith.constant 0 : i32
    return %c0_i32, %c0_i32_0 : i32, i32
  }
  func.func @transform_3(%arg0: i32) -> (i32, i32) {
    %c0_i32 = arith.constant 0 : i32
    %c0_i32_0 = arith.constant 0 : i32
    %c0_i32_1 = arith.constant 0 : i32
    return %c0_i32, %c0_i32_0 : i32, i32
  }
  func.func @transform_4(%arg0: i32) -> (i32, i32, i32) {
    %c0_i32 = arith.constant 0 : i32
    %c0_i32_0 = arith.constant 0 : i32
    %c0_i32_1 = arith.constant 0 : i32
    return %arg0, %c0_i32, %c0_i32_0 : i32, i32, i32
  }
}

</mosaic_0001>

<bundles_post_ra>
// kernel: tpu_custom_call.1
= control target key start
LH: loop header
LB: loop body
LE: loop exit
PB: predicated region body
PF: predicated region fallthrough
CT: control target
= control target key end

     0   :  { %9 = vsyncpa [#allocation3], 0  ;;  %s671_s0 = inlined_call_operand.hbm [shape: f32[2,16,256], index: 0, kind: input, shape index: {}]   ;;  %s672_s1 = inlined_call_operand.vmem [shape: f32[2,1,16], index: 1, kind: input, shape index: {}]   ;;  %s673_s2 = inlined_call_operand.vmem [shape: f32[16,16], index: 2, kind: input, shape index: {}]   ;;  %s674_s3 = inlined_call_operand.vmem [shape: f32[16,1], index: 3, kind: input, shape index: {}]   ;;  %s675_s4 = inlined_call_operand.hbm [shape: f32[2,16,256], index: 4, kind: output, shape index: {}]  }
   0x1   :  { %10 = vsyncpa [#allocation4], 0  ;;  %s546_s15 = smov [#allocation2]   ;;  %s498_s19 = scalar_lea.hbm %s671_s0, 1024 }
   0x2   :  { %s16_s16 = sshll.u32 %s546_s15, 4  ;;  %p499_p0 = scmp.ne.s32.totalorder %s671_s0, %s498_s19  ;;  %s17_s16 = int_to_ptr.vmem [resolvable:$true] %s16_s16 }
   0x3   :  { %p502_p1 = scmp.lt.u32.totalorder %s498_s19, %s671_s0 }
   0x5   :  { %p504_p2 = pnand %p502_p1, %p499_p0 }
   0x7   :  { %507 = shalt.err (!%p504_p2)
}
   0x8   :  { %s508_s24 = scalar_lea.vmem %s17_s16, 1024  ;;  %p513_p4 = scmp.lt.s32.totalorder %s17_s16, %s17_s16 }
   0x9   :  { %p509_p3 = scmp.ne.s32.totalorder %s17_s16, %s508_s24  ;;  %p514_p5 = scmp.lt.s32.totalorder %s508_s24, %s508_s24 }
   0xb   :  { %p515_p6 = por %p514_p5, %p513_p4 }
   0xd   :  { %p516_p7 = pnand %p515_p6, %p509_p3 }
   0xf   :  { %519 = shalt.err (!%p516_p7)
}
  0x10   :  { %s547_s25 = smov 256   ;;  %s548_s26 = smov 16  }
  0x11   :  { %22 = dma.hbm_to_vmem [thread:$0]  %s671_s0, 1024, %s17_s16, [#allocation3], %s547_s25, %s547_s25, %s548_s26  }
  0x12   :  { %542 = dma.done.wait [#allocation3], 1024  }
  0x13   :  { %543 = vsyncadd [#allocation3], 4294966272  ;;  %v549_v0 = vmov 0.0   ;;  %v550_v1 = vmov 0   ;;  %v37_v2 = vld [vmem:[#allocation2 + $0x8] sm:$0xff]  ;;  %v39_v3 = vld [vmem:[#allocation2 + $0x18] sm:$0xff]  ;;  %v229_v63 = vlaneseq }
  0x14   :  { %121 = vmatprep.mubr.f32.mxu0 %v549_v0  ;;  %485 = vset.pattern.permute.xlu0 %v550_v1  ;;  %v36_v4 = vld [vmem:[#allocation2] sm:$0xff]  ;;  %v463_v5 = vpack.c.bf16 %v39_v3, %v37_v2  ;;  %v38_v6 = vld [vmem:[#allocation2 + $0x10] sm:$0xff]  ;;  %vm50_vm0 = vcmask 130048   ;;  %v35_v10 = vld [vmem:[%s674_s3 + $0x8] sm:$0xff]  ;;  %vm209_vm1 = vcmask 1040384  }
  0x15   :  { %202 = vmatprep.mubr.f32.mxu1 %v549_v0  ;;  %v465_v7 = vpack.c.bf16 %v38_v6, %v36_v4  ;;  %v34_v8 = vld [vmem:[%s674_s3] sm:$0xff]  ;;  %v33_v11 = vld [vmem:[%s673_s2 + $0x8] sm:$0xff]  ;;  %v249_v20 = vld [vmem:[#allocation2 + $0x38] sm:$0xff] }
  0x16   :  { %464 = vmatprep.subr.bf16.mxu0 %v463_v5  ;;  %42 = vperm.xlu0 %485, %v34_v8   ;;  %v32_v9 = vld [vmem:[%s673_s2] sm:$0xff]  ;;  %v247_v19 = vld [vmem:[#allocation2 + $0x28] sm:$0xff]  ;;  %v248_v27 = vld [vmem:[#allocation2 + $0x30] sm:$0xff] }
  0x17   :  { %466 = vmatpush1.bf16.msra.mxu0 %v465_v7  ;;  %v471_v25 = vpack.c.bf16 %v249_v20, %v247_v19  ;;  %v246_v26 = vld [vmem:[#allocation2 + $0x20] sm:$0xff] }
  0x18   :  { %v134_v29 = vld [vmem:[%s672_s1] sm:$0x1]  ;;  %v473_v30 = vpack.c.bf16 %v248_v27, %v246_v26  ;;  %v461_v46 = vld [vmem:[%s672_s1 + $0x1] sm:$0x1]  ;;  %s551_s1 = smov [#allocation5]  }
  0x19   :  { %s444_s12 = sshll.u32 %s551_s1, 4  ;;  %s445_s12 = int_to_ptr.vmem [resolvable:$true] %s444_s12 }
  0x1a   :  { %456 = vmatmul.mubr.msk.f32.vlgmr.msra.gmra.mrb[0].mxu0 %vm50_vm0, %v32_v9  ;;  %47 = vperm.xlu0 %485, %v35_v10   ;;  %s520_s13 = scalar_lea.vmem %s445_s12, 1024  ;;  %p525_p9 = scmp.lt.s32.totalorder %s445_s12, %s445_s12 }
  0x1b   :  { %127 = vmatprep.mubr.f32.mxu0 %v549_v0  ;;  %p521_p8 = scmp.ne.s32.totalorder %s445_s12, %s520_s13  ;;  %p526_p10 = scmp.lt.s32.totalorder %s520_s13, %s520_s13 }
  0x1d   :  { %p527_p11 = por %p526_p10, %p525_p9 }
  0x1e   :  { %457 = vmatmul.mubr.msk.f32.gmra.mrb[2].mxu0 %vm50_vm0, %v33_v11 }
  0x1f   :  { %396 = vmatprep.mubr.f32.mxu0 %v549_v0  ;;  %p528_p12 = pnand %p527_p11, %p521_p8 }
  0x95   :  { %v43_v12 = vpop.permute.xlu0 %42 }
  0x99   :  { %v48_v15 = vpop.permute.xlu0 %47 }
  0xed   :  { %v123_v13 = vpop.f32.mrb[0].mxu0 }
  0xee   :  { %v125_v14 = vpop.f32.mrb[1].mxu0  ;;  %v612_v23 = vadd.f32 %v123_v13, %v43_v12 }
  0xef   :  { %v608_v21 = vadd.f32 %v125_v14, %v43_v12 }
  0xf1   :  { %v129_v16 = vpop.f32.mrb[2].mxu0 }
  0xf2   :  { %v606_v17 = vadd.f32 %v129_v16, %v48_v15  ;;  %v131_v18 = vpop.f32.mrb[3].mxu0 }
  0xf3   :  { %v610_v22 = vadd.f32 %v131_v18, %v48_v15 }
  0xf4   :  { %v469_v28 = vpack.c.bf16 %v606_v17, %v612_v23 }
  0xf5   :  { %v467_v24 = vpack.c.bf16 %v610_v22, %v608_v21 }
  0xf7   :  { %468 = vmatprep.subr.bf16.mxu1 %v467_v24 }
  0xf8   :  { %470 = vmatpush1.bf16.msra.mxu1 %v469_v28 }
  0xf9   :  { %472 = vmatprep.subr.bf16.mxu1 %v471_v25 }
  0xfb   :  { %458 = vmatmul.mubr.msk.f32.vlgmr.msra.gmra.mrb[0].mxu1 %vm50_vm0, %v134_v29 }
  0xfc   :  { %474 = vmatpush1.bf16.msra.mxu1 %v473_v30  ;;  %314 = vmatprep.mubr.f32.mxu1 %v549_v0 }
  0xff   :  { %459 = vmatmul.mubr.msk.f32.vlgmr.msra.gmra.mrb[2].mxu1 %vm50_vm0, %v32_v9 }
 0x100   :  { %320 = vmatprep.mubr.f32.mxu1 %v549_v0  ;;  %v230_v0 = vshrl.u32 %v229_v63, 7 }
 0x102   :  { %v231_v1 = vsub.s32 0, %v230_v0 }
 0x103   :  { %460 = vmatmul.mubr.msk.f32.gmra.mrb[4].mxu1 %vm50_vm0, %v33_v11 }
 0x1ce   :  { %v204_v31 = vpop.f32.mrb[0].mxu1 }
 0x1cf   :  { %v206_v32 = vpop.f32.mrb[1].mxu1  ;;  %v210_v33 = vsel %vm209_vm1, %v204_v31, -inf }
 0x1d0   :  { %v211_v34 = vsel %vm209_vm1, %v206_v32, -inf }
 0x1d1   :  { %v212_v35 = vmax.f32 %v210_v33, %v211_v34 }
 0x1d2   :  { %v316_v36 = vpop.f32.mrb[2].mxu1 }
 0x1d3   :  { %v318_v37 = vpop.f32.mrb[3].mxu1  ;;  %213 = vmax.xlane.f32.xlu1 %v212_v35  ;;  %v632_v43 = vadd.f32 %v316_v36, %v43_v12 }
 0x1d4   :  { %v628_v41 = vadd.f32 %v318_v37, %v43_v12 }
 0x1d6   :  { %v322_v38 = vpop.f32.mrb[4].mxu1 }
 0x1d7   :  { %v626_v39 = vadd.f32 %v322_v38, %v48_v15  ;;  %v324_v40 = vpop.f32.mrb[5].mxu1 }
 0x1d8   :  { %v630_v42 = vadd.f32 %v324_v40, %v48_v15 }
 0x1d9   :  { %v477_v45 = vpack.c.bf16 %v626_v39, %v632_v43 }
 0x1da   :  { %v475_v44 = vpack.c.bf16 %v630_v42, %v628_v41 }
 0x1dc   :  { %476 = vmatprep.subr.bf16.mxu0 %v475_v44 }
 0x1dd   :  { %478 = vmatpush1.bf16.msra.mxu0 %v477_v45 }
 0x1e0   :  { %462 = vmatmul.mubr.msk.f32.vlgmr.msra.gmra.mrb[4].mxu0 %vm50_vm0, %v461_v46 }
 0x260   :  { %v214_v47 = vpop.xlane.xlu1 %213 }
 0x261   :  { %v215_v48 = vsub.f32 %v204_v31, %v214_v47  ;;  %v216_v49 = vsub.f32 %v206_v32, %v214_v47 }
 0x263   :  { %v217_v50 = vmul.f32 1.442695, %v215_v48  ;;  %v219_v51 = vmul.f32 1.442695, %v216_v49 }
 0x265   :  { %486 = vpow2.f32 %v217_v50 }
 0x266   :  { %488 = vpow2.f32 %v219_v51 }
 0x26f   :  { %v487_v52 = vpop.eup %486 }
 0x270   :  { %v489_v53 = vpop.eup %488  ;;  %v221_v54 = vsel %vm209_vm1, %v487_v52, 0.0 }
 0x271   :  { %v222_v55 = vsel %vm209_vm1, %v489_v53, 0.0 }
 0x272   :  { %v223_v56 = vadd.f32 %v222_v55, %v221_v54 }
 0x274   :  { %224 = vadd.xlane.f32.xlu0 %v223_v56 }
 0x2b3   :  { %v398_v57 = vpop.f32.mrb[4].mxu0 }
 0x2b4   :  { %v403_v58 = vsel %vm209_vm1, %v398_v57, -inf  ;;  %v400_v59 = vpop.f32.mrb[5].mxu0 }
 0x2b5   :  { %v404_v60 = vsel %vm209_vm1, %v400_v59, -inf }
 0x2b6   :  { %v405_v61 = vmax.f32 %v403_v58, %v404_v60 }
 0x2b8   :  { %406 = vmax.xlane.f32.xlu1 %v405_v61 }
 0x301   :  { %v225_v62 = vpop.xlane.xlu0 %224 }
 0x302   :  { %490 = vrcp.f32 %v225_v62 }
 0x30c   :  { %v491_v2 = vpop.eup %490 }
 0x30d   :  { %v227_v3 = vmul.f32 %v491_v2, %v487_v52  ;;  %v228_v4 = vmul.f32 %v491_v2, %v489_v53 }
 0x30f   :  { %v232_v5 = vrot.slane %v227_v3, %v231_v1  ;;  %v236_v6 = vrot.slane %v228_v4, %v231_v1 }
 0x311   :  { %v237_v7 = vmul.f32 %v232_v5, %v612_v23  ;;  %v238_v8 = vmul.f32 %v236_v6, %v608_v21  ;;  %v239_v9 = vmul.f32 %v232_v5, %v606_v17  ;;  %v240_v10 = vmul.f32 %v236_v6, %v610_v22 }
 0x313   :  { %241 = vst [vmem:[#allocation5] sm:$0xff] %v237_v7  ;;  %242 = vst [vmem:[#allocation5 + $0x8] sm:$0xff] %v238_v8 }
 0x314   :  { %243 = vst [vmem:[#allocation5 + $0x10] sm:$0xff] %v239_v9  ;;  %244 = vst [vmem:[#allocation5 + $0x18] sm:$0xff] %v240_v10 }
 0x345   :  { %v407_v11 = vpop.xlane.xlu1 %406 }
 0x346   :  { %v408_v12 = vsub.f32 %v398_v57, %v407_v11  ;;  %v409_v13 = vsub.f32 %v400_v59, %v407_v11 }
 0x348   :  { %v410_v14 = vmul.f32 1.442695, %v408_v12  ;;  %v412_v15 = vmul.f32 1.442695, %v409_v13 }
 0x34a   :  { %492 = vpow2.f32 %v410_v14 }
 0x34b   :  { %494 = vpow2.f32 %v412_v15 }
 0x354   :  { %v493_v16 = vpop.eup %492 }
 0x355   :  { %v495_v18 = vpop.eup %494  ;;  %v414_v19 = vsel %vm209_vm1, %v493_v16, 0.0 }
 0x356   :  { %v415_v20 = vsel %vm209_vm1, %v495_v18, 0.0 }
 0x357   :  { %v416_v17 = vadd.f32 %v415_v20, %v414_v19 }
 0x359   :  { %417 = vadd.xlane.f32.xlu1 %v416_v17 }
 0x3e6   :  { %v418_v21 = vpop.xlane.xlu1 %417 }
 0x3e7   :  { %496 = vrcp.f32 %v418_v21 }
 0x3f1   :  { %v497_v22 = vpop.eup %496 }
 0x3f2   :  { %v420_v23 = vmul.f32 %v497_v22, %v493_v16  ;;  %v421_v24 = vmul.f32 %v497_v22, %v495_v18 }
 0x3f4   :  { %v425_v25 = vrot.slane %v420_v23, %v231_v1  ;;  %v429_v26 = vrot.slane %v421_v24, %v231_v1 }
 0x3f6   :  { %v430_v27 = vmul.f32 %v425_v25, %v632_v43  ;;  %v431_v28 = vmul.f32 %v429_v26, %v628_v41  ;;  %v432_v29 = vmul.f32 %v425_v25, %v626_v39  ;;  %v433_v30 = vmul.f32 %v429_v26, %v630_v42 }
 0x3f8   :  { %435 = vst [vmem:[#allocation5 + $0x20] sm:$0xff] %v430_v27  ;;  %436 = vst [vmem:[#allocation5 + $0x28] sm:$0xff] %v431_v28 }
 0x3f9   :  { %437 = vst [vmem:[#allocation5 + $0x30] sm:$0xff] %v432_v29  ;;  %438 = vst [vmem:[#allocation5 + $0x38] sm:$0xff] %v433_v30 }
 0x3fa   :  { %531 = shalt.err (!%p528_p12)
}
 0x3fb   :  { %s532_s16 = scalar_lea.hbm %s675_s4, 1024 }
 0x3fc   :  { %p533_p13 = scmp.ne.s32.totalorder %s675_s4, %s532_s16  ;;  %p536_p0 = scmp.lt.u32.totalorder %s532_s16, %s675_s4 }
 0x3fe   :  { %p538_p1 = pnand %p536_p0, %p533_p13 }
 0x400   :  { %541 = shalt.err (!%p538_p1)
}
 0x401   :  { %450 = dma.vmem_to_hbm [thread:$0]  %s445_s12, 1024, %s675_s4, [#allocation4], %s547_s25, %s547_s25, %s548_s26  }
 0x402   :  { %544 = dma.done.wait [#allocation4], 1024  }
 0x403   :  { %545 = vsyncadd [#allocation4], 4294966272 }
 0x404   :  { %454 = vsyncpa [#allocation3], 1 }
 0x405   :  { %455 = vsyncpa [#allocation4], 1 }

</bundles_post_ra>
